<compile_context>
chip_gen: v7x
topology: tpu7x:2x2x1
jax: 0.10.0
libtpu: 0.0.40
codegen_flags: <defaults>
</compile_context>

<pallas_src>
import jax
import jax.numpy as jnp
from jax.experimental import pallas as pl
from jax.experimental.pallas import tpu as pltpu

_LANES = 128


def _level_to_level_kernel(wc_ref, bc_ref, ww_ref, bw_ref,
                           low_ref, high_ref, *rest):
    # low/high/out[/wl] refs: (C, tS, 128) VMEM tiles (dense pixel slabs per channel)
    # wc_ref: (C, C) SMEM   bc_ref: (C,) SMEM   ww_ref: (C,) SMEM   bw_ref: (1,) SMEM
    # rest = (out_ref[, wl_ref], w_scratch)
    out_ref = rest[0]
    wl_ref = rest[1] if len(rest) == 3 else None
    w_scr = rest[-1]                                   # (tS, 128) VMEM scratch
    C = low_ref.shape[0]

    # Hoist all SMEM scalar reads once per grid step (loops below are unrolled).
    ww = [ww_ref[ci] for ci in range(C)]
    bw = bw_ref[0]
    wc = [[wc_ref[co, ci] for ci in range(C)] for co in range(C)]
    bc = [bc_ref[co] for co in range(C)]

    # weight branch: Conv2d(C -> 1, k=1)(low) -> dense (tS, 128) slab, staged in VMEM.
    w = ww[0] * low_ref[0]
    for ci in range(1, C):
        w = w + ww[ci] * low_ref[ci]
    w_scr[...] = w + bw

    # conv (C -> C, k=1) + relu + scale + residual, one dense channel slab at a time so
    # the stores are whole-slab (unmasked) vst interleaved with the VPU MAC chain.
    for co in range(C):
        acc = wc[co][0] * low_ref[0]
        for ci in range(1, C):
            acc = acc + wc[co][ci] * low_ref[ci]
        row = jnp.maximum(acc + bc[co], 0.0) * w_scr[...]
        if wl_ref is not None:
            wl_ref[co] = row.astype(wl_ref.dtype)
        out_ref[co] = (row + high_ref[co]).astype(out_ref.dtype)


def level_to_level(high_nchw, low_nchw, conv_w, conv_b, wconv_w, wconv_b,
                   *, return_weighted_low=True, vmem_budget_bytes=24 << 20):
    """high_nchw, low_nchw: (N, C, H, W) float32.
    conv_w:  (C, C, 1, 1)  conv_b:  (C,)   -- the C->C 1x1 conv
    wconv_w: (1, C, 1, 1)  wconv_b: (1,)   -- the C->1 1x1 conv
    Returns (out, weighted_low) (or just out if return_weighted_low=False), NCHW.
    """
    N, C, H, W = low_nchw.shape
    assert high_nchw.shape == (N, C, H, W)
    HW = H * W

    # Lane-dense view: pixels on the 128-lane axis, dense (rows, 128) slabs per channel.
    rows = pl.cdiv(HW, _LANES)
    HWp = rows * _LANES
    low = low_nchw.reshape(N, C, HW)
    high = high_nchw.reshape(N, C, HW)
    if HWp != HW:
        # One wrapper-side pad copy; kernel math in the padded lanes is discarded below.
        pad = ((0, 0), (0, 0), (0, HWp - HW))
        low = jnp.pad(low, pad)
        high = jnp.pad(high, pad)
    low = low.reshape(N, C, rows, _LANES)
    high = high.reshape(N, C, rows, _LANES)

    # Pixel-row tile: multiple of 8 (or the full dim), sized so that
    # 4 streamed arrays x 2 pipeline buffers x (C * tS * 128 * 4B) ~= vmem_budget_bytes.
    per_row_bytes = 4 * 2 * C * _LANES * 4
    tS = max(8, (vmem_budget_bytes // per_row_bytes) // 8 * 8)
    if rows <= tS:
        tS = rows                       # full dim is always a legal block shape
    grid = (N, pl.cdiv(rows, tS))       # masked tail block: safe, purely elementwise

    # 1x1 conv parameters as small SMEM tables.
    wc = conv_w.reshape(C, C).astype(jnp.float32)     # [c_out, c_in]
    bc = conv_b.reshape(C).astype(jnp.float32)
    ww = wconv_w.reshape(C).astype(jnp.float32)       # (1, C, 1, 1) -> (C,)
    bw = wconv_b.reshape(1).astype(jnp.float32)

    tile_spec = pl.BlockSpec((None, C, tS, _LANES), lambda n, j: (n, 0, j, 0))
    smem_spec = pl.BlockSpec(memory_space=pltpu.MemorySpace.SMEM)

    n_out = 2 if return_weighted_low else 1
    out_shape = tuple(jax.ShapeDtypeStruct((N, C, rows, _LANES), jnp.float32)
                      for _ in range(n_out))
    out_specs = tuple(tile_spec for _ in range(n_out))

    # Explicit scoped-VMEM limit (defaults: 16 MiB v5e / 32 MiB v6e,v7x) with headroom,
    # capped well under v7x's 64 MiB physical VMEM per TensorCore.
    n_streams = 2 + n_out
    needed = n_streams * 2 * C * tS * _LANES * 4 + tS * _LANES * 4
    vmem_limit = int(min(max(needed + (8 << 20), 32 << 20), 48 << 20))

    outs = pl.pallas_call(
        _level_to_level_kernel,
        out_shape=out_shape,
        grid=grid,
        in_specs=[smem_spec,            # conv weight  (C, C)
                  smem_spec,            # conv bias    (C,)
                  smem_spec,            # weight_conv1x1 weight (C,)
                  smem_spec,            # weight_conv1x1 bias   (1,)
                  tile_spec,            # low
                  tile_spec],           # high
        out_specs=out_specs,
        scratch_shapes=[pltpu.VMEM((tS, _LANES), jnp.float32)],
        compiler_params=pltpu.CompilerParams(
            dimension_semantics=("parallel", "parallel"),
            vmem_limit_bytes=vmem_limit),
    )(wc, bc, ww, bw, low, high)

    def unview(x):
        x = x.reshape(N, C, HWp)
        if HWp != HW:
            x = x[:, :, :HW]
        return x.reshape(N, C, H, W)

    if return_weighted_low:
        out, wl = outs
        return unview(out), unview(wl)
    return unview(outs[0])


def _reference(high, low, conv_w, conv_b, wconv_w, wconv_b):
    # Pure-JAX NCHW reference of the PyTorch forward.
    def conv1x1(x, w, b):
        y = jnp.einsum('nchw,oc->nohw', x, w[:, :, 0, 0])
        return y + b[None, :, None, None]
    weight = conv1x1(low, wconv_w, wconv_b)                        # (N,1,H,W)
    weighted_low = jax.nn.relu(conv1x1(low, conv_w, conv_b)) * weight
    out = weighted_low + high
    return out, weighted_low


if __name__ == "__main__":
    key = jax.random.PRNGKey(0)
    N, C, H, W = 2, 4, 16, 16

    k = jax.random.split(key, 6)
    high = jax.random.normal(k[0], (N, C, H, W), jnp.float32)
    low = jax.random.normal(k[1], (N, C, H, W), jnp.float32)

    # Deterministic synthetic parameters (shapes match nn.Conv2d in __init__).
    conv_w = 0.1 * jax.random.normal(k[2], (C, C, 1, 1), jnp.float32)
    conv_b = 0.1 * jax.random.normal(k[3], (C,), jnp.float32)
    wconv_w = 0.1 * jax.random.normal(k[4], (1, C, 1, 1), jnp.float32)
    wconv_b = 0.1 * jax.random.normal(k[5], (1,), jnp.float32)

    out, weighted_low = level_to_level(high, low, conv_w, conv_b, wconv_w, wconv_b)
    jax.block_until_ready((out, weighted_low))

    ref_out, ref_wl = _reference(high, low, conv_w, conv_b, wconv_w, wconv_b)
    assert jnp.allclose(out, ref_out, atol=1e-5, rtol=1e-5)
    assert jnp.allclose(weighted_low, ref_wl, atol=1e-5, rtol=1e-5)

    # Optional single-output path (skips the weighted_low HBM stream).
    out_only = level_to_level(high, low, conv_w, conv_b, wconv_w, wconv_b,
                              return_weighted_low=False)
    jax.block_until_ready(out_only)
    assert jnp.allclose(out_only, ref_out, atol=1e-5, rtol=1e-5)

    print("KERNEL_OK")
</pallas_src>

<mosaic_0001>
module attributes {stable_mosaic.version = 11 : i64} {
  func.func @_level_to_level_kernel(%arg0: i32, %arg1: i32, %arg2: memref<4x4xf32, #tpu.memory_space<smem>>, %arg3: memref<4xf32, #tpu.memory_space<smem>>, %arg4: memref<4xf32, #tpu.memory_space<smem>>, %arg5: memref<1xf32, #tpu.memory_space<smem>>, %arg6: memref<1x4x2x128xf32, #tpu.memory_space<vmem>>, %arg7: memref<1x4x2x128xf32, #tpu.memory_space<vmem>>, %arg8: memref<1x4x2x128xf32, #tpu.memory_space<vmem>>, %arg9: memref<1x4x2x128xf32, #tpu.memory_space<vmem>>, %arg10: memref<2x128xf32, #tpu.memory_space<vmem>>) attributes {dimension_semantics = [#tpu.dimension_semantics<parallel>, #tpu.dimension_semantics<parallel>], iteration_bounds = array<i64: 2, 1>, scalar_prefetch = 0 : i64, scratch_operands = 1 : i64, tpu.core_type = #tpu.core_type<tc>, window_params = [{transform_indices = @transform_0, window_bounds = array<i64: 4, 4>}, {transform_indices = @transform_1, window_bounds = array<i64: 4>}, {transform_indices = @transform_2, window_bounds = array<i64: 4>}, {transform_indices = @transform_3, window_bounds = array<i64: 1>}, {transform_indices = @transform_4, window_bounds = array<i64: 1, 4, 2, 128>}, {transform_indices = @transform_5, window_bounds = array<i64: 1, 4, 2, 128>}, {transform_indices = @transform_6, window_bounds = array<i64: 1, 4, 2, 128>}, {transform_indices = @transform_7, window_bounds = array<i64: 1, 4, 2, 128>}]} {
    %c0 = arith.constant 0 : index
    %0 = memref.load %arg4[%c0] : memref<4xf32, #tpu.memory_space<smem>>
    %c1 = arith.constant 1 : index
    %1 = memref.load %arg4[%c1] : memref<4xf32, #tpu.memory_space<smem>>
    %c2 = arith.constant 2 : index
    %2 = memref.load %arg4[%c2] : memref<4xf32, #tpu.memory_space<smem>>
    %c3 = arith.constant 3 : index
    %3 = memref.load %arg4[%c3] : memref<4xf32, #tpu.memory_space<smem>>
    %c0_0 = arith.constant 0 : index
    %4 = memref.load %arg5[%c0_0] : memref<1xf32, #tpu.memory_space<smem>>
    %c0_1 = arith.constant 0 : index
    %c0_2 = arith.constant 0 : index
    %5 = memref.load %arg2[%c0_1, %c0_2] : memref<4x4xf32, #tpu.memory_space<smem>>
    %c0_3 = arith.constant 0 : index
    %c1_4 = arith.constant 1 : index
    %6 = memref.load %arg2[%c0_3, %c1_4] : memref<4x4xf32, #tpu.memory_space<smem>>
    %c0_5 = arith.constant 0 : index
    %c2_6 = arith.constant 2 : index
    %7 = memref.load %arg2[%c0_5, %c2_6] : memref<4x4xf32, #tpu.memory_space<smem>>
    %c0_7 = arith.constant 0 : index
    %c3_8 = arith.constant 3 : index
    %8 = memref.load %arg2[%c0_7, %c3_8] : memref<4x4xf32, #tpu.memory_space<smem>>
    %c1_9 = arith.constant 1 : index
    %c0_10 = arith.constant 0 : index
    %9 = memref.load %arg2[%c1_9, %c0_10] : memref<4x4xf32, #tpu.memory_space<smem>>
    %c1_11 = arith.constant 1 : index
    %c1_12 = arith.constant 1 : index
    %10 = memref.load %arg2[%c1_11, %c1_12] : memref<4x4xf32, #tpu.memory_space<smem>>
    %c1_13 = arith.constant 1 : index
    %c2_14 = arith.constant 2 : index
    %11 = memref.load %arg2[%c1_13, %c2_14] : memref<4x4xf32, #tpu.memory_space<smem>>
    %c1_15 = arith.constant 1 : index
    %c3_16 = arith.constant 3 : index
    %12 = memref.load %arg2[%c1_15, %c3_16] : memref<4x4xf32, #tpu.memory_space<smem>>
    %c2_17 = arith.constant 2 : index
    %c0_18 = arith.constant 0 : index
    %13 = memref.load %arg2[%c2_17, %c0_18] : memref<4x4xf32, #tpu.memory_space<smem>>
    %c2_19 = arith.constant 2 : index
    %c1_20 = arith.constant 1 : index
    %14 = memref.load %arg2[%c2_19, %c1_20] : memref<4x4xf32, #tpu.memory_space<smem>>
    %c2_21 = arith.constant 2 : index
    %c2_22 = arith.constant 2 : index
    %15 = memref.load %arg2[%c2_21, %c2_22] : memref<4x4xf32, #tpu.memory_space<smem>>
    %c2_23 = arith.constant 2 : index
    %c3_24 = arith.constant 3 : index
    %16 = memref.load %arg2[%c2_23, %c3_24] : memref<4x4xf32, #tpu.memory_space<smem>>
    %c3_25 = arith.constant 3 : index
    %c0_26 = arith.constant 0 : index
    %17 = memref.load %arg2[%c3_25, %c0_26] : memref<4x4xf32, #tpu.memory_space<smem>>
    %c3_27 = arith.constant 3 : index
    %c1_28 = arith.constant 1 : index
    %18 = memref.load %arg2[%c3_27, %c1_28] : memref<4x4xf32, #tpu.memory_space<smem>>
    %c3_29 = arith.constant 3 : index
    %c2_30 = arith.constant 2 : index
    %19 = memref.load %arg2[%c3_29, %c2_30] : memref<4x4xf32, #tpu.memory_space<smem>>
    %c3_31 = arith.constant 3 : index
    %c3_32 = arith.constant 3 : index
    %20 = memref.load %arg2[%c3_31, %c3_32] : memref<4x4xf32, #tpu.memory_space<smem>>
    %c0_33 = arith.constant 0 : index
    %21 = memref.load %arg3[%c0_33] : memref<4xf32, #tpu.memory_space<smem>>
    %c1_34 = arith.constant 1 : index
    %22 = memref.load %arg3[%c1_34] : memref<4xf32, #tpu.memory_space<smem>>
    %c2_35 = arith.constant 2 : index
    %23 = memref.load %arg3[%c2_35] : memref<4xf32, #tpu.memory_space<smem>>
    %c3_36 = arith.constant 3 : index
    %24 = memref.load %arg3[%c3_36] : memref<4xf32, #tpu.memory_space<smem>>
    %c0_37 = arith.constant 0 : index
    %c0_38 = arith.constant 0 : index
    %c0_39 = arith.constant 0 : index
    %c0_40 = arith.constant 0 : index
    %25 = vector.load %arg6[%c0_37, %c0_38, %c0_39, %c0_40] : memref<1x4x2x128xf32, #tpu.memory_space<vmem>>, vector<1x1x2x128xf32>
    %26 = vector.shape_cast %25 : vector<1x1x2x128xf32> to vector<2x128xf32>
    %27 = vector.broadcast %0 : f32 to vector<2x128xf32>
    %28 = arith.mulf %27, %26 : vector<2x128xf32>
    %c0_41 = arith.constant 0 : index
    %c1_42 = arith.constant 1 : index
    %c0_43 = arith.constant 0 : index
    %c0_44 = arith.constant 0 : index
    %29 = vector.load %arg6[%c0_41, %c1_42, %c0_43, %c0_44] : memref<1x4x2x128xf32, #tpu.memory_space<vmem>>, vector<1x1x2x128xf32>
    %30 = vector.shape_cast %29 : vector<1x1x2x128xf32> to vector<2x128xf32>
    %31 = vector.broadcast %1 : f32 to vector<2x128xf32>
    %32 = arith.mulf %31, %30 : vector<2x128xf32>
    %33 = arith.addf %28, %32 : vector<2x128xf32>
    %c0_45 = arith.constant 0 : index
    %c2_46 = arith.constant 2 : index
    %c0_47 = arith.constant 0 : index
    %c0_48 = arith.constant 0 : index
    %34 = vector.load %arg6[%c0_45, %c2_46, %c0_47, %c0_48] : memref<1x4x2x128xf32, #tpu.memory_space<vmem>>, vector<1x1x2x128xf32>
    %35 = vector.shape_cast %34 : vector<1x1x2x128xf32> to vector<2x128xf32>
    %36 = vector.broadcast %2 : f32 to vector<2x128xf32>
    %37 = arith.mulf %36, %35 : vector<2x128xf32>
    %38 = arith.addf %33, %37 : vector<2x128xf32>
    %c0_49 = arith.constant 0 : index
    %c3_50 = arith.constant 3 : index
    %c0_51 = arith.constant 0 : index
    %c0_52 = arith.constant 0 : index
    %39 = vector.load %arg6[%c0_49, %c3_50, %c0_51, %c0_52] : memref<1x4x2x128xf32, #tpu.memory_space<vmem>>, vector<1x1x2x128xf32>
    %40 = vector.shape_cast %39 : vector<1x1x2x128xf32> to vector<2x128xf32>
    %41 = vector.broadcast %3 : f32 to vector<2x128xf32>
    %42 = arith.mulf %41, %40 : vector<2x128xf32>
    %43 = arith.addf %38, %42 : vector<2x128xf32>
    %44 = vector.broadcast %4 : f32 to vector<2x128xf32>
    %45 = arith.addf %43, %44 : vector<2x128xf32>
    %c0_53 = arith.constant 0 : index
    %c0_54 = arith.constant 0 : index
    %46 = vector.load %arg10[%c0_53, %c0_54] : memref<2x128xf32, #tpu.memory_space<vmem>>, vector<2x128xf32>
    tpu.vector_store %arg10[%c0_53, %c0_54], %45 {strides = array<i32>} : memref<2x128xf32, #tpu.memory_space<vmem>>, vector<2x128xf32>,
    %c0_55 = arith.constant 0 : index
    %c0_56 = arith.constant 0 : index
    %c0_57 = arith.constant 0 : index
    %c0_58 = arith.constant 0 : index
    %47 = vector.load %arg6[%c0_55, %c0_56, %c0_57, %c0_58] : memref<1x4x2x128xf32, #tpu.memory_space<vmem>>, vector<1x1x2x128xf32>
    %48 = vector.shape_cast %47 : vector<1x1x2x128xf32> to vector<2x128xf32>
    %49 = vector.broadcast %5 : f32 to vector<2x128xf32>
    %50 = arith.mulf %49, %48 : vector<2x128xf32>
    %c0_59 = arith.constant 0 : index
    %c1_60 = arith.constant 1 : index
    %c0_61 = arith.constant 0 : index
    %c0_62 = arith.constant 0 : index
    %51 = vector.load %arg6[%c0_59, %c1_60, %c0_61, %c0_62] : memref<1x4x2x128xf32, #tpu.memory_space<vmem>>, vector<1x1x2x128xf32>
    %52 = vector.shape_cast %51 : vector<1x1x2x128xf32> to vector<2x128xf32>
    %53 = vector.broadcast %6 : f32 to vector<2x128xf32>
    %54 = arith.mulf %53, %52 : vector<2x128xf32>
    %55 = arith.addf %50, %54 : vector<2x128xf32>
    %c0_63 = arith.constant 0 : index
    %c2_64 = arith.constant 2 : index
    %c0_65 = arith.constant 0 : index
    %c0_66 = arith.constant 0 : index
    %56 = vector.load %arg6[%c0_63, %c2_64, %c0_65, %c0_66] : memref<1x4x2x128xf32, #tpu.memory_space<vmem>>, vector<1x1x2x128xf32>
    %57 = vector.shape_cast %56 : vector<1x1x2x128xf32> to vector<2x128xf32>
    %58 = vector.broadcast %7 : f32 to vector<2x128xf32>
    %59 = arith.mulf %58, %57 : vector<2x128xf32>
    %60 = arith.addf %55, %59 : vector<2x128xf32>
    %c0_67 = arith.constant 0 : index
    %c3_68 = arith.constant 3 : index
    %c0_69 = arith.constant 0 : index
    %c0_70 = arith.constant 0 : index
    %61 = vector.load %arg6[%c0_67, %c3_68, %c0_69, %c0_70] : memref<1x4x2x128xf32, #tpu.memory_space<vmem>>, vector<1x1x2x128xf32>
    %62 = vector.shape_cast %61 : vector<1x1x2x128xf32> to vector<2x128xf32>
    %63 = vector.broadcast %8 : f32 to vector<2x128xf32>
    %64 = arith.mulf %63, %62 : vector<2x128xf32>
    %65 = arith.addf %60, %64 : vector<2x128xf32>
    %66 = vector.broadcast %21 : f32 to vector<2x128xf32>
    %67 = arith.addf %65, %66 : vector<2x128xf32>
    %cst = arith.constant 0.000000e+00 : f32
    %68 = vector.broadcast %cst : f32 to vector<2x128xf32>
    %69 = arith.maximumf %67, %68 : vector<2x128xf32>
    %c0_71 = arith.constant 0 : index
    %c0_72 = arith.constant 0 : index
    %70 = vector.load %arg10[%c0_71, %c0_72] : memref<2x128xf32, #tpu.memory_space<vmem>>, vector<2x128xf32>
    %71 = arith.mulf %69, %70 : vector<2x128xf32>
    %c0_73 = arith.constant 0 : index
    %c0_74 = arith.constant 0 : index
    %c0_75 = arith.constant 0 : index
    %c0_76 = arith.constant 0 : index
    %72 = vector.load %arg9[%c0_73, %c0_74, %c0_75, %c0_76] : memref<1x4x2x128xf32, #tpu.memory_space<vmem>>, vector<1x1x2x128xf32>
    %73 = vector.shape_cast %72 : vector<1x1x2x128xf32> to vector<2x128xf32>
    %74 = vector.shape_cast %71 : vector<2x128xf32> to vector<1x1x2x128xf32>
    tpu.vector_store %arg9[%c0_73, %c0_74, %c0_75, %c0_76], %74 {strides = array<i32>} : memref<1x4x2x128xf32, #tpu.memory_space<vmem>>, vector<1x1x2x128xf32>,
    %c0_77 = arith.constant 0 : index
    %c0_78 = arith.constant 0 : index
    %c0_79 = arith.constant 0 : index
    %c0_80 = arith.constant 0 : index
    %75 = vector.load %arg7[%c0_77, %c0_78, %c0_79, %c0_80] : memref<1x4x2x128xf32, #tpu.memory_space<vmem>>, vector<1x1x2x128xf32>
    %76 = vector.shape_cast %75 : vector<1x1x2x128xf32> to vector<2x128xf32>
    %77 = arith.addf %71, %76 : vector<2x128xf32>
    %c0_81 = arith.constant 0 : index
    %c0_82 = arith.constant 0 : index
    %c0_83 = arith.constant 0 : index
    %c0_84 = arith.constant 0 : index
    %78 = vector.load %arg8[%c0_81, %c0_82, %c0_83, %c0_84] : memref<1x4x2x128xf32, #tpu.memory_space<vmem>>, vector<1x1x2x128xf32>
    %79 = vector.shape_cast %78 : vector<1x1x2x128xf32> to vector<2x128xf32>
    %80 = vector.shape_cast %77 : vector<2x128xf32> to vector<1x1x2x128xf32>
    tpu.vector_store %arg8[%c0_81, %c0_82, %c0_83, %c0_84], %80 {strides = array<i32>} : memref<1x4x2x128xf32, #tpu.memory_space<vmem>>, vector<1x1x2x128xf32>,
    %c0_85 = arith.constant 0 : index
    %c0_86 = arith.constant 0 : index
    %c0_87 = arith.constant 0 : index
    %c0_88 = arith.constant 0 : index
    %81 = vector.load %arg6[%c0_85, %c0_86, %c0_87, %c0_88] : memref<1x4x2x128xf32, #tpu.memory_space<vmem>>, vector<1x1x2x128xf32>
    %82 = vector.shape_cast %81 : vector<1x1x2x128xf32> to vector<2x128xf32>
    %83 = vector.broadcast %9 : f32 to vector<2x128xf32>
    %84 = arith.mulf %83, %82 : vector<2x128xf32>
    %c0_89 = arith.constant 0 : index
    %c1_90 = arith.constant 1 : index
    %c0_91 = arith.constant 0 : index
    %c0_92 = arith.constant 0 : index
    %85 = vector.load %arg6[%c0_89, %c1_90, %c0_91, %c0_92] : memref<1x4x2x128xf32, #tpu.memory_space<vmem>>, vector<1x1x2x128xf32>
    %86 = vector.shape_cast %85 : vector<1x1x2x128xf32> to vector<2x128xf32>
    %87 = vector.broadcast %10 : f32 to vector<2x128xf32>
    %88 = arith.mulf %87, %86 : vector<2x128xf32>
    %89 = arith.addf %84, %88 : vector<2x128xf32>
    %c0_93 = arith.constant 0 : index
    %c2_94 = arith.constant 2 : index
    %c0_95 = arith.constant 0 : index
    %c0_96 = arith.constant 0 : index
    %90 = vector.load %arg6[%c0_93, %c2_94, %c0_95, %c0_96] : memref<1x4x2x128xf32, #tpu.memory_space<vmem>>, vector<1x1x2x128xf32>
    %91 = vector.shape_cast %90 : vector<1x1x2x128xf32> to vector<2x128xf32>
    %92 = vector.broadcast %11 : f32 to vector<2x128xf32>
    %93 = arith.mulf %92, %91 : vector<2x128xf32>
    %94 = arith.addf %89, %93 : vector<2x128xf32>
    %c0_97 = arith.constant 0 : index
    %c3_98 = arith.constant 3 : index
    %c0_99 = arith.constant 0 : index
    %c0_100 = arith.constant 0 : index
    %95 = vector.load %arg6[%c0_97, %c3_98, %c0_99, %c0_100] : memref<1x4x2x128xf32, #tpu.memory_space<vmem>>, vector<1x1x2x128xf32>
    %96 = vector.shape_cast %95 : vector<1x1x2x128xf32> to vector<2x128xf32>
    %97 = vector.broadcast %12 : f32 to vector<2x128xf32>
    %98 = arith.mulf %97, %96 : vector<2x128xf32>
    %99 = arith.addf %94, %98 : vector<2x128xf32>
    %100 = vector.broadcast %22 : f32 to vector<2x128xf32>
    %101 = arith.addf %99, %100 : vector<2x128xf32>
    %cst_101 = arith.constant 0.000000e+00 : f32
    %102 = vector.broadcast %cst_101 : f32 to vector<2x128xf32>
    %103 = arith.maximumf %101, %102 : vector<2x128xf32>
    %c0_102 = arith.constant 0 : index
    %c0_103 = arith.constant 0 : index
    %104 = vector.load %arg10[%c0_102, %c0_103] : memref<2x128xf32, #tpu.memory_space<vmem>>, vector<2x128xf32>
    %105 = arith.mulf %103, %104 : vector<2x128xf32>
    %c0_104 = arith.constant 0 : index
    %c1_105 = arith.constant 1 : index
    %c0_106 = arith.constant 0 : index
    %c0_107 = arith.constant 0 : index
    %106 = vector.load %arg9[%c0_104, %c1_105, %c0_106, %c0_107] : memref<1x4x2x128xf32, #tpu.memory_space<vmem>>, vector<1x1x2x128xf32>
    %107 = vector.shape_cast %106 : vector<1x1x2x128xf32> to vector<2x128xf32>
    %108 = vector.shape_cast %105 : vector<2x128xf32> to vector<1x1x2x128xf32>
    tpu.vector_store %arg9[%c0_104, %c1_105, %c0_106, %c0_107], %108 {strides = array<i32>} : memref<1x4x2x128xf32, #tpu.memory_space<vmem>>, vector<1x1x2x128xf32>,
    %c0_108 = arith.constant 0 : index
    %c1_109 = arith.constant 1 : index
    %c0_110 = arith.constant 0 : index
    %c0_111 = arith.constant 0 : index
    %109 = vector.load %arg7[%c0_108, %c1_109, %c0_110, %c0_111] : memref<1x4x2x128xf32, #tpu.memory_space<vmem>>, vector<1x1x2x128xf32>
    %110 = vector.shape_cast %109 : vector<1x1x2x128xf32> to vector<2x128xf32>
    %111 = arith.addf %105, %110 : vector<2x128xf32>
    %c0_112 = arith.constant 0 : index
    %c1_113 = arith.constant 1 : index
    %c0_114 = arith.constant 0 : index
    %c0_115 = arith.constant 0 : index
    %112 = vector.load %arg8[%c0_112, %c1_113, %c0_114, %c0_115] : memref<1x4x2x128xf32, #tpu.memory_space<vmem>>, vector<1x1x2x128xf32>
    %113 = vector.shape_cast %112 : vector<1x1x2x128xf32> to vector<2x128xf32>
    %114 = vector.shape_cast %111 : vector<2x128xf32> to vector<1x1x2x128xf32>
    tpu.vector_store %arg8[%c0_112, %c1_113, %c0_114, %c0_115], %114 {strides = array<i32>} : memref<1x4x2x128xf32, #tpu.memory_space<vmem>>, vector<1x1x2x128xf32>,
    %c0_116 = arith.constant 0 : index
    %c0_117 = arith.constant 0 : index
    %c0_118 = arith.constant 0 : index
    %c0_119 = arith.constant 0 : index
    %115 = vector.load %arg6[%c0_116, %c0_117, %c0_118, %c0_119] : memref<1x4x2x128xf32, #tpu.memory_space<vmem>>, vector<1x1x2x128xf32>
    %116 = vector.shape_cast %115 : vector<1x1x2x128xf32> to vector<2x128xf32>
    %117 = vector.broadcast %13 : f32 to vector<2x128xf32>
    %118 = arith.mulf %117, %116 : vector<2x128xf32>
    %c0_120 = arith.constant 0 : index
    %c1_121 = arith.constant 1 : index
    %c0_122 = arith.constant 0 : index
    %c0_123 = arith.constant 0 : index
    %119 = vector.load %arg6[%c0_120, %c1_121, %c0_122, %c0_123] : memref<1x4x2x128xf32, #tpu.memory_space<vmem>>, vector<1x1x2x128xf32>
    %120 = vector.shape_cast %119 : vector<1x1x2x128xf32> to vector<2x128xf32>
    %121 = vector.broadcast %14 : f32 to vector<2x128xf32>
    %122 = arith.mulf %121, %120 : vector<2x128xf32>
    %123 = arith.addf %118, %122 : vector<2x128xf32>
    %c0_124 = arith.constant 0 : index
    %c2_125 = arith.constant 2 : index
    %c0_126 = arith.constant 0 : index
    %c0_127 = arith.constant 0 : index
    %124 = vector.load %arg6[%c0_124, %c2_125, %c0_126, %c0_127] : memref<1x4x2x128xf32, #tpu.memory_space<vmem>>, vector<1x1x2x128xf32>
    %125 = vector.shape_cast %124 : vector<1x1x2x128xf32> to vector<2x128xf32>
    %126 = vector.broadcast %15 : f32 to vector<2x128xf32>
    %127 = arith.mulf %126, %125 : vector<2x128xf32>
    %128 = arith.addf %123, %127 : vector<2x128xf32>
    %c0_128 = arith.constant 0 : index
    %c3_129 = arith.constant 3 : index
    %c0_130 = arith.constant 0 : index
    %c0_131 = arith.constant 0 : index
    %129 = vector.load %arg6[%c0_128, %c3_129, %c0_130, %c0_131] : memref<1x4x2x128xf32, #tpu.memory_space<vmem>>, vector<1x1x2x128xf32>
    %130 = vector.shape_cast %129 : vector<1x1x2x128xf32> to vector<2x128xf32>
    %131 = vector.broadcast %16 : f32 to vector<2x128xf32>
    %132 = arith.mulf %131, %130 : vector<2x128xf32>
    %133 = arith.addf %128, %132 : vector<2x128xf32>
    %134 = vector.broadcast %23 : f32 to vector<2x128xf32>
    %135 = arith.addf %133, %134 : vector<2x128xf32>
    %cst_132 = arith.constant 0.000000e+00 : f32
    %136 = vector.broadcast %cst_132 : f32 to vector<2x128xf32>
    %137 = arith.maximumf %135, %136 : vector<2x128xf32>
    %c0_133 = arith.constant 0 : index
    %c0_134 = arith.constant 0 : index
    %138 = vector.load %arg10[%c0_133, %c0_134] : memref<2x128xf32, #tpu.memory_space<vmem>>, vector<2x128xf32>
    %139 = arith.mulf %137, %138 : vector<2x128xf32>
    %c0_135 = arith.constant 0 : index
    %c2_136 = arith.constant 2 : index
    %c0_137 = arith.constant 0 : index
    %c0_138 = arith.constant 0 : index
    %140 = vector.load %arg9[%c0_135, %c2_136, %c0_137, %c0_138] : memref<1x4x2x128xf32, #tpu.memory_space<vmem>>, vector<1x1x2x128xf32>
    %141 = vector.shape_cast %140 : vector<1x1x2x128xf32> to vector<2x128xf32>
    %142 = vector.shape_cast %139 : vector<2x128xf32> to vector<1x1x2x128xf32>
    tpu.vector_store %arg9[%c0_135, %c2_136, %c0_137, %c0_138], %142 {strides = array<i32>} : memref<1x4x2x128xf32, #tpu.memory_space<vmem>>, vector<1x1x2x128xf32>,
    %c0_139 = arith.constant 0 : index
    %c2_140 = arith.constant 2 : index
    %c0_141 = arith.constant 0 : index
    %c0_142 = arith.constant 0 : index
    %143 = vector.load %arg7[%c0_139, %c2_140, %c0_141, %c0_142] : memref<1x4x2x128xf32, #tpu.memory_space<vmem>>, vector<1x1x2x128xf32>
    %144 = vector.shape_cast %143 : vector<1x1x2x128xf32> to vector<2x128xf32>
    %145 = arith.addf %139, %144 : vector<2x128xf32>
    %c0_143 = arith.constant 0 : index
    %c2_144 = arith.constant 2 : index
    %c0_145 = arith.constant 0 : index
    %c0_146 = arith.constant 0 : index
    %146 = vector.load %arg8[%c0_143, %c2_144, %c0_145, %c0_146] : memref<1x4x2x128xf32, #tpu.memory_space<vmem>>, vector<1x1x2x128xf32>
    %147 = vector.shape_cast %146 : vector<1x1x2x128xf32> to vector<2x128xf32>
    %148 = vector.shape_cast %145 : vector<2x128xf32> to vector<1x1x2x128xf32>
    tpu.vector_store %arg8[%c0_143, %c2_144, %c0_145, %c0_146], %148 {strides = array<i32>} : memref<1x4x2x128xf32, #tpu.memory_space<vmem>>, vector<1x1x2x128xf32>,
    %c0_147 = arith.constant 0 : index
    %c0_148 = arith.constant 0 : index
    %c0_149 = arith.constant 0 : index
    %c0_150 = arith.constant 0 : index
    %149 = vector.load %arg6[%c0_147, %c0_148, %c0_149, %c0_150] : memref<1x4x2x128xf32, #tpu.memory_space<vmem>>, vector<1x1x2x128xf32>
    %150 = vector.shape_cast %149 : vector<1x1x2x128xf32> to vector<2x128xf32>
    %151 = vector.broadcast %17 : f32 to vector<2x128xf32>
    %152 = arith.mulf %151, %150 : vector<2x128xf32>
    %c0_151 = arith.constant 0 : index
    %c1_152 = arith.constant 1 : index
    %c0_153 = arith.constant 0 : index
    %c0_154 = arith.constant 0 : index
    %153 = vector.load %arg6[%c0_151, %c1_152, %c0_153, %c0_154] : memref<1x4x2x128xf32, #tpu.memory_space<vmem>>, vector<1x1x2x128xf32>
    %154 = vector.shape_cast %153 : vector<1x1x2x128xf32> to vector<2x128xf32>
    %155 = vector.broadcast %18 : f32 to vector<2x128xf32>
    %156 = arith.mulf %155, %154 : vector<2x128xf32>
    %157 = arith.addf %152, %156 : vector<2x128xf32>
    %c0_155 = arith.constant 0 : index
    %c2_156 = arith.constant 2 : index
    %c0_157 = arith.constant 0 : index
    %c0_158 = arith.constant 0 : index
    %158 = vector.load %arg6[%c0_155, %c2_156, %c0_157, %c0_158] : memref<1x4x2x128xf32, #tpu.memory_space<vmem>>, vector<1x1x2x128xf32>
    %159 = vector.shape_cast %158 : vector<1x1x2x128xf32> to vector<2x128xf32>
    %160 = vector.broadcast %19 : f32 to vector<2x128xf32>
    %161 = arith.mulf %160, %159 : vector<2x128xf32>
    %162 = arith.addf %157, %161 : vector<2x128xf32>
    %c0_159 = arith.constant 0 : index
    %c3_160 = arith.constant 3 : index
    %c0_161 = arith.constant 0 : index
    %c0_162 = arith.constant 0 : index
    %163 = vector.load %arg6[%c0_159, %c3_160, %c0_161, %c0_162] : memref<1x4x2x128xf32, #tpu.memory_space<vmem>>, vector<1x1x2x128xf32>
    %164 = vector.shape_cast %163 : vector<1x1x2x128xf32> to vector<2x128xf32>
    %165 = vector.broadcast %20 : f32 to vector<2x128xf32>
    %166 = arith.mulf %165, %164 : vector<2x128xf32>
    %167 = arith.addf %162, %166 : vector<2x128xf32>
    %168 = vector.broadcast %24 : f32 to vector<2x128xf32>
    %169 = arith.addf %167, %168 : vector<2x128xf32>
    %cst_163 = arith.constant 0.000000e+00 : f32
    %170 = vector.broadcast %cst_163 : f32 to vector<2x128xf32>
    %171 = arith.maximumf %169, %170 : vector<2x128xf32>
    %c0_164 = arith.constant 0 : index
    %c0_165 = arith.constant 0 : index
    %172 = vector.load %arg10[%c0_164, %c0_165] : memref<2x128xf32, #tpu.memory_space<vmem>>, vector<2x128xf32>
    %173 = arith.mulf %171, %172 : vector<2x128xf32>
    %c0_166 = arith.constant 0 : index
    %c3_167 = arith.constant 3 : index
    %c0_168 = arith.constant 0 : index
    %c0_169 = arith.constant 0 : index
    %174 = vector.load %arg9[%c0_166, %c3_167, %c0_168, %c0_169] : memref<1x4x2x128xf32, #tpu.memory_space<vmem>>, vector<1x1x2x128xf32>
    %175 = vector.shape_cast %174 : vector<1x1x2x128xf32> to vector<2x128xf32>
    %176 = vector.shape_cast %173 : vector<2x128xf32> to vector<1x1x2x128xf32>
    tpu.vector_store %arg9[%c0_166, %c3_167, %c0_168, %c0_169], %176 {strides = array<i32>} : memref<1x4x2x128xf32, #tpu.memory_space<vmem>>, vector<1x1x2x128xf32>,
    %c0_170 = arith.constant 0 : index
    %c3_171 = arith.constant 3 : index
    %c0_172 = arith.constant 0 : index
    %c0_173 = arith.constant 0 : index
    %177 = vector.load %arg7[%c0_170, %c3_171, %c0_172, %c0_173] : memref<1x4x2x128xf32, #tpu.memory_space<vmem>>, vector<1x1x2x128xf32>
    %178 = vector.shape_cast %177 : vector<1x1x2x128xf32> to vector<2x128xf32>
    %179 = arith.addf %173, %178 : vector<2x128xf32>
    %c0_174 = arith.constant 0 : index
    %c3_175 = arith.constant 3 : index
    %c0_176 = arith.constant 0 : index
    %c0_177 = arith.constant 0 : index
    %180 = vector.load %arg8[%c0_174, %c3_175, %c0_176, %c0_177] : memref<1x4x2x128xf32, #tpu.memory_space<vmem>>, vector<1x1x2x128xf32>
    %181 = vector.shape_cast %180 : vector<1x1x2x128xf32> to vector<2x128xf32>
    %182 = vector.shape_cast %179 : vector<2x128xf32> to vector<1x1x2x128xf32>
    tpu.vector_store %arg8[%c0_174, %c3_175, %c0_176, %c0_177], %182 {strides = array<i32>} : memref<1x4x2x128xf32, #tpu.memory_space<vmem>>, vector<1x1x2x128xf32>,
    return
  }
  func.func @transform_0(%arg0: i32, %arg1: i32) -> (i32, i32) {
    %c0_i32 = arith.constant 0 : i32
    %c0_i32_0 = arith.constant 0 : i32
    %c0_i32_1 = arith.constant 0 : i32
    return %c0_i32, %c0_i32_0 : i32, i32
  }
  func.func @transform_1(%arg0: i32, %arg1: i32) -> i32 {
    %c0_i32 = arith.constant 0 : i32
    %c0_i32_0 = arith.constant 0 : i32
    return %c0_i32 : i32
  }
  func.func @transform_2(%arg0: i32, %arg1: i32) -> i32 {
    %c0_i32 = arith.constant 0 : i32
    %c0_i32_0 = arith.constant 0 : i32
    return %c0_i32 : i32
  }
  func.func @transform_3(%arg0: i32, %arg1: i32) -> i32 {
    %c0_i32 = arith.constant 0 : i32
    %c0_i32_0 = arith.constant 0 : i32
    return %c0_i32 : i32
  }
  func.func @transform_4(%arg0: i32, %arg1: i32) -> (i32, i32, i32, i32) {
    %c0_i32 = arith.constant 0 : i32
    %c0_i32_0 = arith.constant 0 : i32
    %c0_i32_1 = arith.constant 0 : i32
    return %arg0, %c0_i32, %arg1, %c0_i32_0 : i32, i32, i32, i32
  }
  func.func @transform_5(%arg0: i32, %arg1: i32) -> (i32, i32, i32, i32) {
    %c0_i32 = arith.constant 0 : i32
    %c0_i32_0 = arith.constant 0 : i32
    %c0_i32_1 = arith.constant 0 : i32
    return %arg0, %c0_i32, %arg1, %c0_i32_0 : i32, i32, i32, i32
  }
  func.func @transform_6(%arg0: i32, %arg1: i32) -> (i32, i32, i32, i32) {
    %c0_i32 = arith.constant 0 : i32
    %c0_i32_0 = arith.constant 0 : i32
    %c0_i32_1 = arith.constant 0 : i32
    return %arg0, %c0_i32, %arg1, %c0_i32_0 : i32, i32, i32, i32
  }
  func.func @transform_7(%arg0: i32, %arg1: i32) -> (i32, i32, i32, i32) {
    %c0_i32 = arith.constant 0 : i32
    %c0_i32_0 = arith.constant 0 : i32
    %c0_i32_1 = arith.constant 0 : i32
    return %arg0, %c0_i32, %arg1, %c0_i32_0 : i32, i32, i32, i32
  }
}

</mosaic_0001>

<bundles_post_ra>
// kernel: tpu_custom_call.1
= control target key start
LH: loop header
LB: loop body
LE: loop exit
PB: predicated region body
PF: predicated region fallthrough
CT: control target
= control target key end

     0   :  { %s1583_s0 = inlined_call_operand.hbm [shape: f32[4,4], index: 0, kind: input, shape index: {}]   ;;  %s1584_s1 = inlined_call_operand.vmem [shape: f32[4], index: 1, kind: input, shape index: {}]   ;;  %s1585_s2 = inlined_call_operand.vmem [shape: f32[4], index: 2, kind: input, shape index: {}]   ;;  %s1586_s3 = inlined_call_operand.<no memory space> [shape: f32[1], index: 3, kind: input, shape index: {}]   ;;  %s1587_s4 = inlined_call_operand.hbm [shape: f32[2,4,2,128], index: 4, kind: input, shape index: {}]   ;;  %s1588_s5 = inlined_call_operand.vmem [shape: f32[2,4,2,128], index: 5, kind: input, shape index: {}]   ;;  %s1589_s6 = inlined_call_operand.hbm [shape: f32[2,4,2,128], index: 6, kind: output, shape index: {0}]   ;;  %s1590_s7 = inlined_call_operand.hbm [shape: f32[2,4,2,128], index: 7, kind: output, shape index: {1}]  }
   0x1   :  { %1595 = sst [smem:[#allocation22_spill]] %s1583_s0 }
   0x2   :  { %1596 = sst [smem:[#allocation23_spill]] %s1584_s1 }
   0x3   :  { %1597 = sst [smem:[#allocation24_spill]] %s1585_s2 }
   0x4   :  { %13 = sst [smem:[#allocation3]] %s1586_s3 }
   0x5   :  { %14 = vsyncpa [#allocation7], 0 }
   0x6   :  { %15 = vsyncpa [#allocation8], 0 }
   0x7   :  { %16 = vsyncpa [#allocation11], 0 }
   0x8   :  { %17 = vsyncpa [#allocation5], 0 }
   0x9   :  { %19 = vsyncpa [#allocation5 + $0x1], 0 }
   0xa   :  { %20 = vsyncpa [#allocation6], 0 }
   0xb   :  { %22 = vsyncpa [#allocation6 + $0x1], 0 }
   0xc   :  { %23 = vsyncpa [#allocation15], 0 }
   0xd   :  { %25 = vsyncpa [#allocation15 + $0x1], 0  ;;  %s1188_s26 = smov 0   ;;  %s1190_s27 = smov 0  }
   0xe   :  { %s1192_s28 = smov 0   ;;  %s1194_s29 = smov 0  }
   0xf   :  { %s1196_s30 = smov 0   ;;  %s1198_s3 = smov 0  }
  0x10 LB: > { %s756_s8 = sadd.s32 4294967295, %s1133_s3   ;;  %s757_s9 = sadd.s32 4294967294, %s1133_s3   ;;  %s1133_s3 = sphi %s1198_s3, %s31_s3   ;;  %s1129_s30 = sphi %s1196_s30, %s1619_s30   ;;  %s1125_s29 = sphi %s1194_s29, %s1618_s29   ;;  %s1121_s28 = sphi %s1192_s28, %s1617_s28   ;;  %s1117_s27 = sphi %s1190_s27, %s1616_s27   ;;  %s1113_s26 = sphi %s1188_s26, %s1615_s26  }
  0x11   : > { %p149_p0 = scmp.ne.s32.totalorder %s1117_s27, %s1113_s26  ;;  %p1222_p1 = scmp.eq.s32.totalorder %s756_s8, 0 }
  0x12   : > { %p1226_p2 = scmp.eq.s32.totalorder %s756_s8, 1  ;;  %p209_p3 = scmp.eq.s32.totalorder %s757_s9, 1 }
  0x13   : > { %s1598_s10 = scalar_select %p1222_p1, 1, 0 }
  0x14   : > { %p1232_p4 = por %p1222_p1, %p149_p0  ;;  %p758_p5 = scmp.ge.s32.totalorder %s1133_s3, 1 }
  0x15   : > { %p1237_p6 = por %p209_p3, %p149_p0  ;;  %p244_p7 = scmp.lt.s32.totalorder %s1133_s3, 3 }
  0x16   : > { %s1600_s12 = scalar_select %p1232_p4, 1, 0 }
  0x17   : > { %s1601_s13 = scalar_select %p1237_p6, 1, 0 }
  0x18   : > { %p1242_p8 = pnand %p758_p5, %p244_p7  ;;  %s1603_s1 = sld [smem:[#allocation23_spill]] }
  0x19   : > { %s1604_s2 = sld [smem:[#allocation24_spill]]  ;;  %s1606_s0 = sld [smem:[#allocation22_spill]] }
  0x1a   : > { %p850_p10 = pneg %p1242_p8 }
  0x1c   : > { %p1257_p11 = pnand %p850_p10, %p1222_p1 }
  0x1e   : > { %s266_s17 = sshll.u32 %s1603_s1, 4  ;;  %p936_p13 = pneg %p1257_p11  ;;  %s267_s17 = int_to_ptr.vmem [resolvable:$true] %s266_s17 }
  0x1f   : > { %s277_s20 = sshll.u32 %s1604_s2, 4  ;;  %s934_s24 = scalar_lea.hbm %s1606_s0, 64  ;;  %s1261_s20 = int_to_ptr.vmem [resolvable:$true] %s277_s20 }
  0x20   : > { %p935_p12 = scmp.ne.s32.totalorder %s1606_s0, %s934_s24  ;;  %p941_p5 = scmp.lt.u32.totalorder %s934_s24, %s1606_s0 }
  0x22   : > { %p937_p0 = pnand %p936_p13, %p935_p12 }
  0x24   : > { %p938_p3 = pneg %p937_p0 }
  0x26   : > { %p943_p7 = pnand %p941_p5, %p938_p3 }
  0x28   : > { %946 = shalt.err (!%p943_p7)
}
  0x29   : > { %s1135_s16 = smov [#allocation4]   ;;  %s947_s22 = scalar_lea.vmem %s267_s17, 16 }
  0x2a   : > { %853 = dma.hbm_to_smem (!%p1257_p11), %s1606_s0, 64, %s1135_s16, [#allocation7]  }
  0x2b   : > { %p948_p10 = scmp.ne.s32.totalorder %s267_s17, %s947_s22  ;;  %p955_p9 = scmp.lt.s32.totalorder %s267_s17, %s267_s17 }
  0x2c   : > { %p956_p6 = scmp.lt.s32.totalorder %s947_s22, %s947_s22 }
  0x2d   : > { %p950_p12 = pnand %p948_p10, %p936_p13 }
  0x2e   : > { %p957_p4 = por %p956_p6, %p955_p9 }
  0x2f   : > { %p951_p0 = pneg %p950_p12 }
  0x31   : > { %p958_p1 = pnand %p957_p4, %p951_p0 }
  0x33   : > { %961 = shalt.err (!%p958_p1)
}
  0x34   : > { %s1136_s23 = smov [#allocation9]   ;;  %s962_s24 = scalar_lea.vmem %s1261_s20, 16 }
  0x35   : > { %856 = dma.vmem_to_smem (!%p1257_p11), %s267_s17, 16, %s1136_s23, [#allocation8]  }
  0x36   : > { %p963_p3 = scmp.ne.s32.totalorder %s1261_s20, %s962_s24  ;;  %p970_p10 = scmp.lt.s32.totalorder %s1261_s20, %s1261_s20 }
  0x37   : > { %p971_p12 = scmp.lt.s32.totalorder %s962_s24, %s962_s24 }
  0x38   : > { %p965_p5 = pnand %p963_p3, %p936_p13 }
  0x39   : > { %p972_p6 = por %p971_p12, %p970_p10 }
  0x3a   : > { %p966_p7 = pneg %p965_p5 }
  0x3c   : > { %p973_p4 = pnand %p972_p6, %p966_p7 }
  0x3e   : > { %976 = shalt.err (!%p973_p4)
}
  0x3f   : > { %s1137_s25 = smov [#allocation10]   ;;  %s43_s17 = sadd.s32 1, %s1129_s30 }
  0x40   : > { %859 = dma.vmem_to_smem (!%p1257_p11), %s1261_s20, 16, %s1137_s25, [#allocation11]  }
  0x41   : > { %p45_p1 = scmp.ge.s32.totalorder %s43_s17, 2  ;;  %s136_s8 = sadd.s32 1, %s1121_s28 }
  0x42   : > { %p143_p9 = scmp.ne.s32.totalorder %s1121_s28, %s1117_s27  ;;  %p144_p13 = scmp.eq.s32.totalorder %s1133_s3, 0 }
  0x43   : > { %s1621_s17 = smov (%p45_p1, %s43_s17), 0  ;;  %p874_p11 = scmp.lt.s32.totalorder %s1133_s3, 2 }
  0x44   : > { %p1304_p0 = por %p144_p13, %p143_p9  ;;  %p1310_p3 = por %p1226_p2, %p143_p9 }
  0x45   : > { %s131_s15 = ssub.s32 %s1129_s30, %s1621_s17  ;;  %s291_s20 = sand.u32 1, %s1121_s28  }
  0x46   : > { %s1608_s9 = scalar_select %p1310_p3, 1, 0 }
  0x47   : > { %p134_p5 = scmp.eq.s32.totalorder %s131_s15, 0  ;;  %s763_s16 = sshll.u32 %s291_s20, 3 }
  0x48   : > { %s828_s19 = sshll.u32 %s1129_s30, 7  ;;  %s295_s11 = scalar_lea.vmem [#allocation12], %s763_s16 }
  0x49   : > { %s1319_s18 = scalar_select %p134_p5, %s1121_s28, %s136_s8  }
  0x4a   : > { %s1325_s24 = scalar_lea.hbm %s1587_s4, %s828_s19  ;;  %s303_s25 = sshll.u32 %s295_s11, 4  ;;  %s1327_s25 = int_to_ptr.vmem [resolvable:$true] %s303_s25 }
  0x4b   : > { %p1331_p2 = pnand %p874_p11, %p1304_p0  ;;  %s1335_s8 = scalar_lea.sflag [#allocation5], %s291_s20 }
  0x4c   : > { %s977_s22 = scalar_lea.hbm %s1325_s24, 128  ;;  %s982_s21 = scalar_lea.hbm %s1587_s4, 256 }
  0x4d   : > { %p978_p7 = scmp.ne.s32.totalorder %s1325_s24, %s977_s22  ;;  %p979_p10 = pneg %p1331_p2 }
  0x4e   : > { %p983_p4 = scmp.lt.u32.totalorder %s1325_s24, %s1587_s4  ;;  %p984_p1 = scmp.lt.u32.totalorder %s982_s21, %s977_s22 }
  0x4f   : > { %p980_p12 = pnand %p979_p10, %p978_p7  ;;  %p986_p13 = scmp.lt.u32.totalorder %s977_s22, %s1325_s24 }
  0x50   : > { %p985_p9 = por %p984_p1, %p983_p4 }
  0x51   : > { %p981_p6 = pneg %p980_p12 }
  0x52   : > { %p987_p0 = por %p986_p13, %p985_p9 }
  0x54   : > { %p988_p11 = pnand %p987_p0, %p981_p6 }
  0x56   : > { %991 = shalt.err (!%p988_p11)
}
  0x57   : > { %s992_s20 = scalar_lea.vmem %s1327_s25, 128  ;;  %s1138_s16 = smov [#allocation12]  }
  0x58   : > { %p993_p5 = scmp.ne.s32.totalorder %s1327_s25, %s992_s20  ;;  %s997_s19 = sshll.u32 %s1138_s16, 4  ;;  %s998_s19 = int_to_ptr.vmem [resolvable:$false] %s997_s19 }
  0x59   : > { %s999_s23 = scalar_lea.vmem %s998_s19, 256  ;;  %p1000_p3 = scmp.lt.s32.totalorder %s1327_s25, %s998_s19 }
  0x5a   : > { %p995_p7 = pnand %p993_p5, %p979_p10  ;;  %p1001_p4 = scmp.lt.s32.totalorder %s999_s23, %s992_s20 }
  0x5c   : > { %p996_p12 = pneg %p995_p7  ;;  %p1002_p1 = por %p1001_p4, %p1000_p3 }
  0x5e   : > { %p1003_p9 = pnand %p1002_p1, %p996_p12 }
  0x60   : > { %1006 = shalt.err (!%p1003_p9)
}
  0x61   : > { %s1139_s22 = smov 32   ;;  %s1140_s21 = smov 2  }
  0x62   : > { %863 = dma.hbm_to_vmem [thread:$0]  (!%p1331_p2), %s1325_s24, 128, %s1327_s25, %s1335_s8, %s1139_s22, %s1139_s22, %s1140_s21  }
  0x63   : > { %326 = sbr.rel (%p1242_p8) target bundleno = 188 (0xbc), region = 44  ;;  %p1610_p10 = scmp.ne.s32.totalorder (!%p1242_p8), %s1598_s10, 0 }
  0x6a   : > { %1088 = dma.done.wait (%p1610_p10), [#allocation7], 64  }
  0x6b   : > { %1090 = vsyncadd (%p1610_p10), [#allocation7], 4294967232 }
  0x6c   : > { %1092 = dma.done.wait (%p1610_p10), [#allocation8], 16  }
  0x6d   : > { %1094 = vsyncadd (%p1610_p10), [#allocation8], 4294967280 }
  0x6e   : > { %1096 = dma.done.wait (%p1610_p10), [#allocation11], 16  }
  0x6f   : > { %1098 = vsyncadd (%p1610_p10), [#allocation11], 4294967280  ;;  %s1378_s14 = sand.u32 1, %s1117_s27   ;;  %p1611_p8 = scmp.ne.s32.totalorder %s1600_s12, 0 }
  0x70   : > { %s1381_s24 = sshll.u32 %s1378_s14, 3  ;;  %s341_s25 = scalar_lea.sflag [#allocation5], %s1378_s14 }
  0x71   : > { %s1385_s15 = scalar_lea.vmem [#allocation12], %s1381_s24 }
  0x72   : > { %1100 = dma.done.wait (%p1611_p8), %s341_s25, 128  }
  0x73   : > { %1102 = vsyncadd (%p1611_p8), %s341_s25, 4294967168 }
  0x74   : > { %349 = sfence }
  0x75   : > { %s397_s10 = sld [smem:[#allocation10]]  ;;  %s775_s8 = sld [smem:[#allocation10 + $0x1]]  ;;  %v422_v0 = vld [vmem:[%s1385_s15] sm:$0x3]  ;;  %v796_v1 = vld [vmem:[%s1385_s15 + $0x2] sm:$0x3] }
  0x76   : > { %s776_s11 = sld [smem:[#allocation10 + $0x2]]  ;;  %s777_s20 = sld [smem:[#allocation10 + $0x3]]  ;;  %v797_v2 = vld [vmem:[%s1385_s15 + $0x4] sm:$0x3]  ;;  %v798_v5 = vld [vmem:[%s1385_s15 + $0x6] sm:$0x3] }
  0x77   : > { %s1391_s16 = sld [smem:[#allocation3]]  ;;  %s402_s19 = sld [smem:[#allocation4]]  ;;  %v443_v6 = vld [vmem:[%s1385_s15] sm:$0x3]  ;;  %v799_v11 = vld [vmem:[%s1385_s15 + $0x2] sm:$0x3] }
  0x78   : > { %s1395_s23 = sld [smem:[#allocation4 + $0x1]]  ;;  %s1397_s12 = sld [smem:[#allocation4 + $0x2]]  ;;  %v800_v13 = vld [vmem:[%s1385_s15 + $0x4] sm:$0x3]  ;;  %v801_v17 = vld [vmem:[%s1385_s15 + $0x6] sm:$0x3] }
  0x79   : > { %s1400_s22 = sld [smem:[#allocation4 + $0x3]]  ;;  %s1404_s21 = sld [smem:[#allocation4 + $0x80]]  ;;  %v467_v21 = vld [vmem:[%s1385_s15] sm:$0x3]  ;;  %v802_v26 = vld [vmem:[%s1385_s15 + $0x2] sm:$0x3] }
  0x7a   : > { %s1406_s25 = sld [smem:[#allocation9]]  ;;  %s1409_s0 = sld [smem:[#allocation4 + $0x81]]  ;;  %v803_v30 = vld [vmem:[%s1385_s15 + $0x4] sm:$0x3]  ;;  %v804_v31 = vld [vmem:[%s1385_s15 + $0x6] sm:$0x3] }
  0x7b   : > { %v423_v3 = vstv %s397_s10  ;;  %v427_v4 = vstv %s775_s8  ;;  %s1412_s10 = sld [smem:[#allocation4 + $0x82]]  ;;  %s1414_s8 = sld [smem:[#allocation4 + $0x83]]  ;;  %v494_v36 = vld [vmem:[%s1385_s15] sm:$0x3]  ;;  %v808_v40 = vld [vmem:[%s1385_s15 + $0x2] sm:$0x3] }
  0x7c   : > { %v424_v7 = vmul.f32 %v423_v3, %v422_v0  ;;  %v428_v8 = vmul.f32 %v796_v1, %v427_v4  ;;  %v432_v9 = vstv %s776_s11  ;;  %v437_v10 = vstv %s777_s20  ;;  %s1417_s11 = sld [smem:[#allocation9 + $0x1]]  ;;  %s1419_s20 = sld [smem:[#allocation4 + $0x100]]  ;;  %v809_v45 = vld [vmem:[%s1385_s15 + $0x4] sm:$0x3]  ;;  %v810_v50 = vld [vmem:[%s1385_s15 + $0x6] sm:$0x3] }
  0x7d   : > { %v433_v12 = vmul.f32 %v797_v2, %v432_v9  ;;  %v438_v15 = vmul.f32 %v798_v5, %v437_v10  ;;  %v444_v16 = vstv %s402_s19  ;;  %s1424_s1 = sld [smem:[#allocation4 + $0x101]]  ;;  %s1426_s2 = sld [smem:[#allocation4 + $0x102]]  ;;  %v440_v27 = vstv %s1391_s16  ;;  %v521_v55 = vld [vmem:[%s1385_s15] sm:$0x3]  ;;  %v814_v60 = vld [vmem:[%s1385_s15 + $0x2] sm:$0x3] }
  0x7e   : > { %v429_v14 = vadd.f32 %v428_v8, %v424_v7  ;;  %v445_v18 = vmul.f32 %v444_v16, %v443_v6  ;;  %v447_v19 = vstv %s1395_s23  ;;  %v451_v20 = vstv %s1397_s12  ;;  %s1430_s19 = sld [smem:[#allocation4 + $0x103]]  ;;  %s1436_s23 = sld [smem:[#allocation4 + $0x180]]  ;;  %v815_v61 = vld [vmem:[%s1385_s15 + $0x4] sm:$0x3]  ;;  %v816_v6 = vld [vmem:[%s1385_s15 + $0x6] sm:$0x3] }
  0x7f   : > { %v448_v23 = vmul.f32 %v799_v11, %v447_v19  ;;  %v452_v24 = vmul.f32 %v800_v13, %v451_v20  ;;  %v455_v25 = vstv %s1400_s22  ;;  %v468_v29 = vstv %s1404_s21  ;;  %s1440_s12 = sld [smem:[#allocation4 + $0x181]]  ;;  %s1442_s22 = sld [smem:[#allocation4 + $0x182]] }
  0x80   : > { %v434_v22 = vadd.f32 %v433_v12, %v429_v14  ;;  %v456_v28 = vmul.f32 %v801_v17, %v455_v25  ;;  %v469_v34 = vmul.f32 %v468_v29, %v467_v21  ;;  %v471_v35 = vstv %s1409_s0  ;;  %s1446_s16 = sld [smem:[#allocation9 + $0x2]]  ;;  %s1449_s21 = sld [smem:[#allocation4 + $0x183]] }
  0x81   : > { %v449_v33 = vadd.f32 %v448_v23, %v445_v18  ;;  %v472_v37 = vmul.f32 %v802_v26, %v471_v35  ;;  %v475_v38 = vstv %s1412_s10  ;;  %v479_v39 = vstv %s1414_s8  ;;  %p389_p3 = scmp.lt.s32.totalorder %s1125_s29, 1  ;;  %s388_s15 = scalar_lea.vmem [#allocation14], %s1381_s24 }
  0x82   : > { %v439_v32 = vadd.f32 %v438_v15, %v434_v22  ;;  %v458_v43 = vstv %s1406_s25  ;;  %v476_v44 = vmul.f32 %v803_v30, %v475_v38  ;;  %v480_v47 = vmul.f32 %v804_v31, %v479_v39  ;;  %s1462_s25 = sld [smem:[#allocation9 + $0x3]]  ;;  %p1612_p6 = scmp.ne.s32.totalorder %s1608_s9, 0 }
  0x83   : > { %v453_v42 = vadd.f32 %v452_v24, %v449_v33  ;;  %v473_v46 = vadd.f32 %v472_v37, %v469_v34  ;;  %v495_v48 = vstv %s1419_s20  ;;  %v498_v49 = vstv %s1424_s1  ;;  %s390_s0 = scalar_select %p389_p3, %s1125_s29, 1 }
  0x84   : > { %v441_v41 = vadd.f32 %v440_v27, %v439_v32  ;;  %v496_v52 = vmul.f32 %v495_v48, %v494_v36  ;;  %v499_v53 = vmul.f32 %v808_v40, %v498_v49  ;;  %v502_v54 = vstv %s1426_s2  ;;  %s1483_s20 = scalar_lea.vmem [#allocation13], %s1381_s24 }
  0x85   : > { %v457_v51 = vadd.f32 %v456_v28, %v453_v42  ;;  %v477_v56 = vadd.f32 %v476_v44, %v473_v46  ;;  %v482_v57 = vstv %s1417_s11  ;;  %v503_v58 = vmul.f32 %v809_v45, %v502_v54  ;;  %s829_s1 = sshll.u32 %s390_s0, 3  ;;  %s585_s11 = sshll.u32 %s388_s15, 4  ;;  %s1488_s11 = int_to_ptr.vmem [resolvable:$true] %s585_s11 }
  0x86   : > { %442 = vst [vmem:[#allocation2] sm:$0x3] %v441_v41  ;;  %v506_v59 = vstv %s1430_s19  ;;  %v500_v63 = vadd.f32 %v499_v53, %v496_v52  ;;  %v522_v1 = vstv %s1436_s23  ;;  %v525_v4 = vstv %s1440_s12  ;;  %s1473_s8 = scalar_lea.vmem %s1588_s5, %s829_s1  ;;  %s830_s19 = sshll.u32 %s1125_s29, 7 }
  0x87   : > { %v459_v62 = vadd.f32 %v458_v43, %v457_v51  ;;  %v507_v0 = vmul.f32 %v810_v50, %v506_v59  ;;  %v481_v2 = vadd.f32 %v480_v47, %v477_v56  ;;  %v523_v3 = vmul.f32 %v522_v1, %v521_v55  ;;  %v464_v17 = vld [vmem:[%s1473_s8] sm:$0x3]  ;;  %v806_v24 = vld [vmem:[%s1473_s8 + $0x2] sm:$0x3]  ;;  %v812_v32 = vld [vmem:[%s1473_s8 + $0x4] sm:$0x3] }
  0x88   : > { %v529_v5 = vstv %s1442_s22  ;;  %v504_v8 = vadd.f32 %v503_v58, %v500_v63  ;;  %v526_v9 = vmul.f32 %v814_v60, %v525_v4  ;;  %v509_v12 = vstv %s1446_s16  ;;  %s568_s23 = sshll.u32 %s1483_s20, 4  ;;  %v818_v38 = vld [vmem:[%s1473_s8 + $0x6] sm:$0x3]  ;;  %s1496_s22 = scalar_lea.hbm %s1590_s7, %s830_s19  ;;  %s1498_s23 = int_to_ptr.vmem [resolvable:$true] %s568_s23 }
  0x89   : > { %v460_v7 = vmax.f32 %v459_v62, 0.0  ;;  %v530_v10 = vmul.f32 %v815_v61, %v529_v5  ;;  %v483_v11 = vadd.f32 %v482_v57, %v481_v2  ;;  %v533_v13 = vstv %s1449_s21  ;;  %s1503_s21 = scalar_lea.hbm %s1589_s6, %s830_s19  ;;  %s554_s0 = scalar_lea.sflag [#allocation15], %s1378_s14 }
  0x8a   : > { %v508_v14 = vadd.f32 %v507_v0, %v504_v8  ;;  %v527_v15 = vadd.f32 %v526_v9, %v523_v3  ;;  %v534_v16 = vmul.f32 %v816_v6, %v533_v13  ;;  %v536_v27 = vstv %s1462_s25  ;;  %s1007_s25 = scalar_lea.vmem %s1488_s11, 128  ;;  %s1141_s1 = smov [#allocation14]  }
  0x8b   : > { %v484_v19 = vmax.f32 %v483_v11, 0.0  ;;  %p1008_p2 = scmp.ne.s32.totalorder %s1488_s11, %s1007_s25  ;;  %s1011_s2 = sshll.u32 %s1141_s1, 4  ;;  %s1012_s2 = int_to_ptr.vmem [resolvable:$false] %s1011_s2 }
  0x8c   : > { %v510_v22 = vadd.f32 %v509_v12, %v508_v14  ;;  %v531_v23 = vadd.f32 %v530_v10, %v527_v15  ;;  %s1013_s10 = scalar_lea.vmem %s1012_s2, 256  ;;  %p1014_p11 = scmp.lt.s32.totalorder %s1488_s11, %s1012_s2 }
  0x8d   : > { %v461_v18 = vld [vmem:[#allocation2] sm:$0x3]  ;;  %p1009_p13 = pnand %p1008_p2, %p1612_p6  ;;  %p1015_p5 = scmp.lt.s32.totalorder %s1013_s10, %s1007_s25 }
  0x8e   : > { %v485_v20 = vld [vmem:[#allocation2] sm:$0x3]  ;;  %v462_v21 = vmul.f32 %v461_v18, %v460_v7  ;;  %v511_v28 = vmax.f32 %v510_v22, 0.0  ;;  %v535_v29 = vadd.f32 %v534_v16, %v531_v23 }
  0x8f   : > { %v486_v25 = vmul.f32 %v485_v20, %v484_v19  ;;  %v512_v26 = vld [vmem:[#allocation2] sm:$0x3]  ;;  %p1010_p0 = pneg %p1009_p13  ;;  %p1016_p7 = por %p1015_p5, %p1014_p11 }
  0x90   : > { %463 = vst [vmem:[%s388_s15] sm:$0x3] %v462_v21  ;;  %v465_v30 = vadd.f32 %v464_v17, %v462_v21  ;;  %v513_v33 = vmul.f32 %v512_v26, %v511_v28  ;;  %v537_v34 = vadd.f32 %v536_v27, %v535_v29  ;;  %v539_v35 = vld [vmem:[#allocation2] sm:$0x3] }
  0x91   : > { %805 = vst [vmem:[%s388_s15 + $0x2] sm:$0x3] %v486_v25  ;;  %v491_v31 = vadd.f32 %v806_v24, %v486_v25  ;;  %p1017_p12 = pnand %p1016_p7, %p1010_p0 }
  0x92   : > { %466 = vst [vmem:[%s1483_s20] sm:$0x3] %v465_v30  ;;  %811 = vst [vmem:[%s388_s15 + $0x4] sm:$0x3] %v513_v33  ;;  %v538_v36 = vmax.f32 %v537_v34, 0.0  ;;  %v518_v37 = vadd.f32 %v812_v32, %v513_v33 }
  0x93   : > { %807 = vst [vmem:[%s1483_s20 + $0x2] sm:$0x3] %v491_v31 }
  0x94   : > { %v540_v39 = vmul.f32 %v539_v35, %v538_v36  ;;  %813 = vst [vmem:[%s1483_s20 + $0x4] sm:$0x3] %v518_v37 }
  0x96   : > { %817 = vst [vmem:[%s388_s15 + $0x6] sm:$0x3] %v540_v39  ;;  %v545_v40 = vadd.f32 %v818_v38, %v540_v39 }
  0x97   : > { %1020 = shalt.err (!%p1017_p12)
}
  0x98   : > { %s1021_s8 = scalar_lea.hbm %s1496_s22, 128  ;;  %s1025_s24 = scalar_lea.hbm %s1590_s7, 256 }
  0x99   : > { %p1022_p4 = scmp.ne.s32.totalorder %s1496_s22, %s1021_s8  ;;  %p1026_p10 = scmp.lt.u32.totalorder %s1496_s22, %s1590_s7 }
  0x9a   : > { %p1027_p8 = scmp.lt.u32.totalorder %s1025_s24, %s1021_s8  ;;  %p1029_p2 = scmp.lt.u32.totalorder %s1021_s8, %s1496_s22 }
  0x9b   : > { %p1023_p1 = pnand %p1022_p4, %p1612_p6 }
  0x9c   : > { %p1028_p3 = por %p1027_p8, %p1026_p10 }
  0x9d   : > { %p1024_p9 = pneg %p1023_p1 }
  0x9e   : > { %p1030_p13 = por %p1029_p2, %p1028_p3 }
  0xa0   : > { %p1031_p0 = pnand %p1030_p13, %p1024_p9 }
  0xa2   : > { %1034 = shalt.err (!%p1031_p0)
}
  0xa3   : > { %s1142_s16 = smov 32   ;;  %s1143_s25 = smov 2   ;;  %819 = vst [vmem:[%s1483_s20 + $0x6] sm:$0x3] %v545_v40 }
  0xa4   : > { %847 = dma.vmem_to_hbm [thread:$0]  (%p1612_p6), %s1488_s11, 128, %s1496_s22, %s554_s0, %s1142_s16, %s1142_s16, %s1143_s25  }
  0xa5   : > { %s549_s1 = scalar_lea.sflag [#allocation6], %s1378_s14  ;;  %s1035_s2 = scalar_lea.vmem %s1498_s23, 128 }
  0xa6   : > { %p1036_p11 = scmp.ne.s32.totalorder %s1498_s23, %s1035_s2  ;;  %s1144_s10 = smov [#allocation13]  }
  0xa7   : > { %s1039_s8 = sshll.u32 %s1144_s10, 4  ;;  %s1040_s8 = int_to_ptr.vmem [resolvable:$false] %s1039_s8 }
  0xa8   : > { %p1037_p5 = pnand %p1036_p11, %p1612_p6  ;;  %s1041_s15 = scalar_lea.vmem %s1040_s8, 256 }
  0xa9   : > { %p1042_p12 = scmp.lt.s32.totalorder %s1498_s23, %s1040_s8  ;;  %p1043_p4 = scmp.lt.s32.totalorder %s1041_s15, %s1035_s2 }
  0xaa   : > { %p1038_p7 = pneg %p1037_p5 }
  0xab   : > { %p1044_p1 = por %p1043_p4, %p1042_p12 }
  0xad   : > { %p1045_p9 = pnand %p1044_p1, %p1038_p7 }
  0xaf   : > { %1048 = shalt.err (!%p1045_p9)
}
  0xb0   : > { %s1049_s11 = scalar_lea.hbm %s1503_s21, 128  ;;  %s1053_s0 = scalar_lea.hbm %s1589_s6, 256 }
  0xb1   : > { %p1050_p10 = scmp.ne.s32.totalorder %s1503_s21, %s1049_s11  ;;  %p1054_p2 = scmp.lt.u32.totalorder %s1503_s21, %s1589_s6 }
  0xb2   : > { %p1055_p13 = scmp.lt.u32.totalorder %s1053_s0, %s1049_s11  ;;  %p1057_p11 = scmp.lt.u32.totalorder %s1049_s11, %s1503_s21 }
  0xb3   : > { %p1051_p8 = pnand %p1050_p10, %p1612_p6 }
  0xb4   : > { %p1056_p0 = por %p1055_p13, %p1054_p2 }
  0xb5   : > { %p1052_p3 = pneg %p1051_p8 }
  0xb6   : > { %p1058_p5 = por %p1057_p11, %p1056_p0 }
  0xb8   : > { %p1059_p7 = pnand %p1058_p5, %p1052_p3 }
  0xba   : > { %1062 = shalt.err (!%p1059_p7)
}
  0xbb   : > { %846 = dma.vmem_to_hbm [thread:$0]  (%p1612_p6), %s1498_s23, 128, %s1503_s21, %s549_s1, %s1142_s16, %s1142_s16, %s1143_s25  }
  0xbc PF: > { %s600_s12 = sand.u32 1, %s1113_s26   ;;  %p1613_p12 = scmp.ne.s32.totalorder %s1601_s13, 0 }
  0xbd   : > { %p1614_p4 = scmp.ge.s32.totalorder %s1133_s3, 2  ;;  %s601_s29 = scalar_lea.sflag [#allocation6], %s600_s12 }
  0xbf   : > { %p865_p1 = pnand %p1614_p4, %p1613_p12 }
  0xc1   : > { %1104 = dma.done.wait (!%p865_p1), %s601_s29, 128  }
  0xc2   : > { %1106 = vsyncadd (!%p865_p1), %s601_s29, 4294967168  ;;  %s610_s9 = scalar_lea.sflag [#allocation15], %s600_s12 }
  0xc3   : > { %1108 = dma.done.wait (!%p865_p1), %s610_s9, 128  }
  0xc4   : > { %1110 = vsyncadd (!%p865_p1), %s610_s9, 4294967168  ;;  %s31_s3 = sadd.s32 1, %s1133_s3   ;;  %s1615_s26 = smov %s1117_s27 }
  0xc5   : > { %p28_p9 = scmp.ge.s32.totalorder %s31_s3, 4   ;;  %s1616_s27 = smov %s1121_s28 }
  0xc6   : > { %s1617_s28 = smov %s1319_s18  ;;  %s1618_s29 = smov %s1129_s30 }
  0xc7   : > { %s1619_s30 = smov %s1621_s17  ;;  %30 = sbr.rel (!%p28_p9) target bundleno = 16 (0x10), region = 135 }
  0xce   :  { %615 = vsyncpa [#allocation5], 1 }
  0xcf   :  { %617 = vsyncpa [#allocation5 + $0x1], 1 }
  0xd0   :  { %618 = vsyncpa [#allocation6], 1 }
  0xd1   :  { %620 = vsyncpa [#allocation6 + $0x1], 1 }
  0xd2   :  { %621 = vsyncpa [#allocation15], 1 }
  0xd3   :  { %623 = vsyncpa [#allocation15 + $0x1], 1 }
  0xd4   :  { %624 = vsyncpa [#allocation7], 1 }
  0xd5   :  { %626 = vsyncpa [#allocation7 + $0x1], 1 }
  0xd6   :  { %627 = vsyncpa [#allocation8], 1 }
  0xd7   :  { %629 = vsyncpa [#allocation8 + $0x1], 1 }
  0xd8   :  { %630 = vsyncpa [#allocation11], 1 }

</bundles_post_ra>
